<compile_context>
chip_gen: v7x
topology: tpu7x:2x2x1
jax: 0.10.0
libtpu: 0.0.40
codegen_flags: <defaults>
</compile_context>

<pallas_src>
import numpy as np
import jax
import jax.numpy as jnp
from jax.experimental import pallas as pl
from jax.experimental.pallas import tpu as pltpu

_LANE = 128   # padded hidden width (lane axis) for the resident weight stack
_SUB = 8      # sublane granularity
_TB_MAX = 1024          # max batch-tile rows (sweepable)
_TARGET_SPLITS = 4      # keep >= ~4 grid steps when batch allows (megacore)


def _round_up(n, m):
    return ((n + m - 1) // m) * m


# ----------------------------- Pallas kernel --------------------------------

def _autoencoder_kernel(x_ref, w_ref, b_ref, kmask_ref, out_ref):
    """Fused 6-layer MLP + sigmoid + key passthrough on one (TB, D) tile.

    x_ref     : (TB, D) f32          natural-width input rows (batch-padded only)
    w_ref     : (6, 128, 128) bf16   padded weights (gather/scatter folded in)
    b_ref     : (6, 1, 128) f32      padded biases
    kmask_ref : (1, D) f32           1.0 at key columns, 0.0 elsewhere
    out_ref   : (TB, D) f32          reconstruction
    """
    x = x_ref[...]                         # (TB, D) f32
    d = x.shape[1]
    xb = x.astype(jnp.bfloat16)

    # Layer 0: contraction width = true D (x is not lane-padded).
    w0 = w_ref[0][:d, :]                   # (D, 128) bf16
    h = jnp.dot(xb, w0, preferred_element_type=jnp.float32) + b_ref[0]
    h = jnp.maximum(h, 0.0)                # Linear(Dr,128) + ReLU (gather folded)

    def dense(h, i):
        # bf16 MXU operands, f32 accumulation; elementwise math stays f32.
        return jnp.dot(h.astype(jnp.bfloat16), w_ref[i],
                       preferred_element_type=jnp.float32) + b_ref[i]

    h = jnp.maximum(dense(h, 1), 0.0)      # Linear(128,64) + ReLU
    h = dense(h, 2)                        # Linear(64,32)
    h = jnp.maximum(dense(h, 3), 0.0)      # Linear(32,64) + ReLU
    h = jnp.maximum(dense(h, 4), 0.0)      # Linear(64,128) + ReLU

    # Layer 5: output width = true D (scatter folded into W6/b6).
    w5 = w_ref[5][:, :d]                   # (128, D) bf16
    z = (jnp.dot(h.astype(jnp.bfloat16), w5, preferred_element_type=jnp.float32)
         + b_ref[5][:, :d])                # (TB, D) f32
    sig = pl.reciprocal(1.0 + jnp.exp(-z), approx=False)   # exact EUP sigmoid

    # Single select: key columns pass x through verbatim, others take decoder out.
    m = jnp.broadcast_to(kmask_ref[...], x.shape)
    out_ref[...] = jnp.where(m != 0.0, x, sig)


def _run_autoencoder(x_pad, ws, bs, kmask, tb):
    """x_pad: (B_pad, D) f32 -> (B_pad, D) f32."""
    b_pad, d = x_pad.shape
    grid = (b_pad // tb,)

    # Advisory cost estimate (flops ~ 2*sum(M*K*N), exp per decoded element).
    flops = 2 * b_pad * (d * 128 + 128 * 64 + 64 * 32 + 32 * 64 + 64 * 128 + 128 * d)
    transcendentals = b_pad * d
    bytes_accessed = 2 * b_pad * d * 4 + ws.size * 2 + bs.size * 4 + kmask.size * 4

    return pl.pallas_call(
        _autoencoder_kernel,
        out_shape=jax.ShapeDtypeStruct((b_pad, d), jnp.float32),
        grid=grid,
        in_specs=[
            pl.BlockSpec((tb, d), lambda i: (i, 0)),               # x tile (natural width)
            pl.BlockSpec((6, _LANE, _LANE), lambda i: (0, 0, 0)),  # weights (VMEM-resident)
            pl.BlockSpec((6, 1, _LANE), lambda i: (0, 0, 0)),      # biases  (VMEM-resident)
            pl.BlockSpec((1, d), lambda i: (0, 0)),                # key mask (VMEM-resident)
        ],
        out_specs=pl.BlockSpec((tb, d), lambda i: (i, 0)),
        compiler_params=pltpu.CompilerParams(
            dimension_semantics=("parallel",),
            vmem_limit_bytes=32 * 1024 * 1024),   # safe on v5e/v6e/v7x, >> actual need
        cost_estimate=pl.CostEstimate(flops=flops,
                                      transcendentals=transcendentals,
                                      bytes_accessed=bytes_accessed),
    )(x_pad, ws, bs, kmask)


# ------------------------------- Model glue ---------------------------------

def init_params(rng, input_dim, key_indexes):
    """Deterministic PyTorch-Linear-style init. Weights stored as (in, out)."""
    dr = input_dim - len(key_indexes)
    dims = [(dr, 128), (128, 64), (64, 32),     # encoder
            (32, 64), (64, 128), (128, dr)]     # decoder
    params = []
    for (fan_in, fan_out) in dims:
        rng, kw, kb = jax.random.split(rng, 3)
        bound = 1.0 / (fan_in ** 0.5)
        w = jax.random.uniform(kw, (fan_in, fan_out), jnp.float32, -bound, bound)
        b = jax.random.uniform(kb, (1, fan_out), jnp.float32, -bound, bound)
        params.append((w, b))
    return params


def pack_params(params, input_dim, key_indexes):
    """Fold column gather/scatter into W1/W6, pad hidden widths to 128 lanes,
    stack weights/biases into single resident operands.  Done once, offline."""
    D = input_dim
    assert D <= _LANE, "this packing assumes input_dim <= 128"
    non_key = [i for i in range(D) if i not in key_indexes]
    dr = len(non_key)

    (w1, b1), (w2, b2), (w3, b3), (w4, b4), (w5, b5), (w6, b6) = [
        (np.asarray(w, np.float32), np.asarray(b, np.float32)) for (w, b) in params]

    G = np.zeros((D, dr), np.float32)          # gather: full -> non-key
    G[non_key, np.arange(dr)] = 1.0
    S = G.T                                    # scatter: non-key -> full

    w1e = G @ w1                               # (D, 128)
    w6e = w6 @ S                               # (128, D)
    b6e = b6.reshape(1, -1) @ S                # (1, D)

    def pad2(a, r, c):
        out = np.zeros((r, c), np.float32)
        out[:a.shape[0], :a.shape[1]] = a
        return out

    ws = np.stack([pad2(w, _LANE, _LANE)
                   for w in (w1e, w2, w3, w4, w5, w6e)])          # (6,128,128)
    bs = np.stack([pad2(b.reshape(1, -1), 1, _LANE)
                   for b in (b1, b2, b3, b4, b5, b6e)])           # (6,1,128)

    kmask = np.zeros((1, D), np.float32)
    kmask[0, list(key_indexes)] = 1.0

    return (jnp.asarray(ws, jnp.bfloat16),
            jnp.asarray(bs, jnp.float32),
            jnp.asarray(kmask, jnp.float32))


def _choose_tile(batch, tb_max=_TB_MAX, target_splits=_TARGET_SPLITS):
    """Biggest tile <= tb_max that keeps >= target_splits grid steps when the
    batch allows, with < 1 tile of padding waste."""
    b8 = _round_up(max(batch, 1), _SUB)
    tb = min(tb_max, _round_up(-(-b8 // target_splits), _SUB))
    tb = max(tb, _SUB)
    b_pad = _round_up(b8, tb)
    return tb, b_pad


def custom_autoencoder_forward(x, packed):
    ws, bs, kmask = packed
    B, D = x.shape
    tb, b_pad = _choose_tile(B)
    x_in = x if b_pad == B else jnp.pad(x, ((0, b_pad - B), (0, 0)))
    out = _run_autoencoder(x_in, ws, bs, kmask, tb)
    return out if b_pad == B else out[:B]


def _reference_forward(x, params, key_indexes):
    """Pure-JAX reference following the original module structure (same bf16
    matmul / f32 accumulation numerics as the kernel, exact sigmoid)."""
    D = x.shape[1]
    non_key = [i for i in range(D) if i not in key_indexes]
    nk = jnp.array(non_key)
    ki = jnp.array(key_indexes)

    def dense(h, w, b):
        return jnp.dot(h.astype(jnp.bfloat16), jnp.asarray(w, jnp.bfloat16),
                       preferred_element_type=jnp.float32) + b

    (w1, b1), (w2, b2), (w3, b3), (w4, b4), (w5, b5), (w6, b6) = params
    h = x[:, nk]
    h = jnp.maximum(dense(h, w1, b1), 0.0)
    h = jnp.maximum(dense(h, w2, b2), 0.0)
    h = dense(h, w3, b3)
    h = jnp.maximum(dense(h, w4, b4), 0.0)
    h = jnp.maximum(dense(h, w5, b5), 0.0)
    dec = jax.nn.sigmoid(dense(h, w6, b6))
    out = jnp.zeros_like(x)
    out = out.at[:, ki].set(x[:, ki])
    out = out.at[:, nk].set(dec)
    return out


if __name__ == "__main__":
    D = 16                          # input_dim
    key_indexes = [0, 5, 10]        # 3 key columns kept verbatim; Dr = 13

    root = jax.random.PRNGKey(0)
    k_x1, k_x2, k_p = jax.random.split(root, 3)
    params = init_params(k_p, D, key_indexes)
    packed = pack_params(params, D, key_indexes)

    # Case 1: tiny batch (single tile).
    x1 = jax.random.uniform(k_x1, (2, D), dtype=jnp.float32)
    out1 = jax.block_until_ready(custom_autoencoder_forward(x1, packed))
    ref1 = jax.block_until_ready(_reference_forward(x1, params, key_indexes))
    assert out1.shape == (2, D) and out1.dtype == jnp.float32
    assert jnp.allclose(out1, ref1, atol=1e-4, rtol=1e-4), \
        f"max abs err {float(jnp.max(jnp.abs(out1 - ref1)))}"

    # Case 2: multi-tile grid + ragged batch padding.
    x2 = jax.random.uniform(k_x2, (37, D), dtype=jnp.float32)
    out2 = jax.block_until_ready(custom_autoencoder_forward(x2, packed))
    ref2 = jax.block_until_ready(_reference_forward(x2, params, key_indexes))
    assert out2.shape == (37, D) and out2.dtype == jnp.float32
    assert jnp.allclose(out2, ref2, atol=1e-4, rtol=1e-4), \
        f"max abs err {float(jnp.max(jnp.abs(out2 - ref2)))}"

    print("KERNEL_OK")
</pallas_src>

<mosaic_0001>
module attributes {stable_mosaic.version = 11 : i64} {
  func.func @_autoencoder_kernel(%arg0: i32, %arg1: memref<8x16xf32, #tpu.memory_space<vmem>>, %arg2: memref<6x128x128xbf16, #tpu.memory_space<vmem>>, %arg3: memref<6x1x128xf32, #tpu.memory_space<vmem>>, %arg4: memref<1x16xf32, #tpu.memory_space<vmem>>, %arg5: memref<8x16xf32, #tpu.memory_space<vmem>>) attributes {dimension_semantics = [#tpu.dimension_semantics<parallel>], iteration_bounds = array<i64: 1>, scalar_prefetch = 0 : i64, scratch_operands = 0 : i64, tpu.core_type = #tpu.core_type<tc>, window_params = [{transform_indices = @transform_0, window_bounds = array<i64: 8, 16>}, {pipeline_mode = #tpu.pipeline_mode<synchronous>, transform_indices = @transform_1, window_bounds = array<i64: 6, 128, 128>}, {pipeline_mode = #tpu.pipeline_mode<synchronous>, transform_indices = @transform_2, window_bounds = array<i64: 6, 1, 128>}, {pipeline_mode = #tpu.pipeline_mode<synchronous>, transform_indices = @transform_3, window_bounds = array<i64: 1, 16>}, {transform_indices = @transform_4, window_bounds = array<i64: 8, 16>}]} {
    %c0 = arith.constant 0 : index
    %c0_0 = arith.constant 0 : index
    %0 = vector.load %arg1[%c0, %c0_0] : memref<8x16xf32, #tpu.memory_space<vmem>>, vector<8x16xf32>
    %1 = arith.truncf %0 : vector<8x16xf32> to vector<8x16xbf16>
    %c0_1 = arith.constant 0 : index
    %c0_2 = arith.constant 0 : index
    %c0_3 = arith.constant 0 : index
    %2 = vector.load %arg2[%c0_1, %c0_2, %c0_3] : memref<6x128x128xbf16, #tpu.memory_space<vmem>>, vector<1x128x128xbf16>
    %3 = vector.shape_cast %2 : vector<1x128x128xbf16> to vector<128x128xbf16>
    %4 = vector.extract_strided_slice %3 {offsets = [0, 0], sizes = [16, 128], strides = [1, 1]} : vector<128x128xbf16> to vector<16x128xbf16>
    %cst = arith.constant dense<0.000000e+00> : vector<8x128xf32>
    %5 = tpu.matmul %1, %4, %cst {dimension_numbers = #tpu.dot_dimension_numbers<[1], [0], [0], [1], [0, 0, 1, 1], [], []>} : vector<8x16xbf16>, vector<16x128xbf16>, vector<8x128xf32> -> vector<8x128xf32>
    %c0_4 = arith.constant 0 : index
    %c0_5 = arith.constant 0 : index
    %c0_6 = arith.constant 0 : index
    %6 = vector.load %arg3[%c0_4, %c0_5, %c0_6] : memref<6x1x128xf32, #tpu.memory_space<vmem>>, vector<1x1x128xf32>
    %7 = vector.shape_cast %6 : vector<1x1x128xf32> to vector<1x128xf32>
    %8 = vector.broadcast %7 : vector<1x128xf32> to vector<8x128xf32>
    %9 = arith.addf %5, %8 : vector<8x128xf32>
    %cst_7 = arith.constant 0.000000e+00 : f32
    %10 = vector.broadcast %cst_7 : f32 to vector<8x128xf32>
    %11 = arith.maximumf %9, %10 : vector<8x128xf32>
    %12 = arith.truncf %11 : vector<8x128xf32> to vector<8x128xbf16>
    %c1 = arith.constant 1 : index
    %c0_8 = arith.constant 0 : index
    %c0_9 = arith.constant 0 : index
    %13 = vector.load %arg2[%c1, %c0_8, %c0_9] : memref<6x128x128xbf16, #tpu.memory_space<vmem>>, vector<1x128x128xbf16>
    %14 = vector.shape_cast %13 : vector<1x128x128xbf16> to vector<128x128xbf16>
    %cst_10 = arith.constant dense<0.000000e+00> : vector<8x128xf32>
    %15 = tpu.matmul %12, %14, %cst_10 {dimension_numbers = #tpu.dot_dimension_numbers<[1], [0], [0], [1], [0, 0, 1, 1], [], []>} : vector<8x128xbf16>, vector<128x128xbf16>, vector<8x128xf32> -> vector<8x128xf32>
    %c1_11 = arith.constant 1 : index
    %c0_12 = arith.constant 0 : index
    %c0_13 = arith.constant 0 : index
    %16 = vector.load %arg3[%c1_11, %c0_12, %c0_13] : memref<6x1x128xf32, #tpu.memory_space<vmem>>, vector<1x1x128xf32>
    %17 = vector.shape_cast %16 : vector<1x1x128xf32> to vector<1x128xf32>
    %18 = vector.broadcast %17 : vector<1x128xf32> to vector<8x128xf32>
    %19 = arith.addf %15, %18 : vector<8x128xf32>
    %cst_14 = arith.constant 0.000000e+00 : f32
    %20 = vector.broadcast %cst_14 : f32 to vector<8x128xf32>
    %21 = arith.maximumf %19, %20 : vector<8x128xf32>
    %22 = arith.truncf %21 : vector<8x128xf32> to vector<8x128xbf16>
    %c2 = arith.constant 2 : index
    %c0_15 = arith.constant 0 : index
    %c0_16 = arith.constant 0 : index
    %23 = vector.load %arg2[%c2, %c0_15, %c0_16] : memref<6x128x128xbf16, #tpu.memory_space<vmem>>, vector<1x128x128xbf16>
    %24 = vector.shape_cast %23 : vector<1x128x128xbf16> to vector<128x128xbf16>
    %cst_17 = arith.constant dense<0.000000e+00> : vector<8x128xf32>
    %25 = tpu.matmul %22, %24, %cst_17 {dimension_numbers = #tpu.dot_dimension_numbers<[1], [0], [0], [1], [0, 0, 1, 1], [], []>} : vector<8x128xbf16>, vector<128x128xbf16>, vector<8x128xf32> -> vector<8x128xf32>
    %c2_18 = arith.constant 2 : index
    %c0_19 = arith.constant 0 : index
    %c0_20 = arith.constant 0 : index
    %26 = vector.load %arg3[%c2_18, %c0_19, %c0_20] : memref<6x1x128xf32, #tpu.memory_space<vmem>>, vector<1x1x128xf32>
    %27 = vector.shape_cast %26 : vector<1x1x128xf32> to vector<1x128xf32>
    %28 = vector.broadcast %27 : vector<1x128xf32> to vector<8x128xf32>
    %29 = arith.addf %25, %28 : vector<8x128xf32>
    %30 = arith.truncf %29 : vector<8x128xf32> to vector<8x128xbf16>
    %c3 = arith.constant 3 : index
    %c0_21 = arith.constant 0 : index
    %c0_22 = arith.constant 0 : index
    %31 = vector.load %arg2[%c3, %c0_21, %c0_22] : memref<6x128x128xbf16, #tpu.memory_space<vmem>>, vector<1x128x128xbf16>
    %32 = vector.shape_cast %31 : vector<1x128x128xbf16> to vector<128x128xbf16>
    %cst_23 = arith.constant dense<0.000000e+00> : vector<8x128xf32>
    %33 = tpu.matmul %30, %32, %cst_23 {dimension_numbers = #tpu.dot_dimension_numbers<[1], [0], [0], [1], [0, 0, 1, 1], [], []>} : vector<8x128xbf16>, vector<128x128xbf16>, vector<8x128xf32> -> vector<8x128xf32>
    %c3_24 = arith.constant 3 : index
    %c0_25 = arith.constant 0 : index
    %c0_26 = arith.constant 0 : index
    %34 = vector.load %arg3[%c3_24, %c0_25, %c0_26] : memref<6x1x128xf32, #tpu.memory_space<vmem>>, vector<1x1x128xf32>
    %35 = vector.shape_cast %34 : vector<1x1x128xf32> to vector<1x128xf32>
    %36 = vector.broadcast %35 : vector<1x128xf32> to vector<8x128xf32>
    %37 = arith.addf %33, %36 : vector<8x128xf32>
    %cst_27 = arith.constant 0.000000e+00 : f32
    %38 = vector.broadcast %cst_27 : f32 to vector<8x128xf32>
    %39 = arith.maximumf %37, %38 : vector<8x128xf32>
    %40 = arith.truncf %39 : vector<8x128xf32> to vector<8x128xbf16>
    %c4 = arith.constant 4 : index
    %c0_28 = arith.constant 0 : index
    %c0_29 = arith.constant 0 : index
    %41 = vector.load %arg2[%c4, %c0_28, %c0_29] : memref<6x128x128xbf16, #tpu.memory_space<vmem>>, vector<1x128x128xbf16>
    %42 = vector.shape_cast %41 : vector<1x128x128xbf16> to vector<128x128xbf16>
    %cst_30 = arith.constant dense<0.000000e+00> : vector<8x128xf32>
    %43 = tpu.matmul %40, %42, %cst_30 {dimension_numbers = #tpu.dot_dimension_numbers<[1], [0], [0], [1], [0, 0, 1, 1], [], []>} : vector<8x128xbf16>, vector<128x128xbf16>, vector<8x128xf32> -> vector<8x128xf32>
    %c4_31 = arith.constant 4 : index
    %c0_32 = arith.constant 0 : index
    %c0_33 = arith.constant 0 : index
    %44 = vector.load %arg3[%c4_31, %c0_32, %c0_33] : memref<6x1x128xf32, #tpu.memory_space<vmem>>, vector<1x1x128xf32>
    %45 = vector.shape_cast %44 : vector<1x1x128xf32> to vector<1x128xf32>
    %46 = vector.broadcast %45 : vector<1x128xf32> to vector<8x128xf32>
    %47 = arith.addf %43, %46 : vector<8x128xf32>
    %cst_34 = arith.constant 0.000000e+00 : f32
    %48 = vector.broadcast %cst_34 : f32 to vector<8x128xf32>
    %49 = arith.maximumf %47, %48 : vector<8x128xf32>
    %c5 = arith.constant 5 : index
    %c0_35 = arith.constant 0 : index
    %c0_36 = arith.constant 0 : index
    %50 = vector.load %arg2[%c5, %c0_35, %c0_36] : memref<6x128x128xbf16, #tpu.memory_space<vmem>>, vector<1x128x128xbf16>
    %51 = vector.shape_cast %50 : vector<1x128x128xbf16> to vector<128x128xbf16>
    %52 = vector.extract_strided_slice %51 {offsets = [0, 0], sizes = [128, 16], strides = [1, 1]} : vector<128x128xbf16> to vector<128x16xbf16>
    %53 = arith.truncf %49 : vector<8x128xf32> to vector<8x128xbf16>
    %cst_37 = arith.constant dense<0.000000e+00> : vector<8x16xf32>
    %54 = tpu.matmul %53, %52, %cst_37 {dimension_numbers = #tpu.dot_dimension_numbers<[1], [0], [0], [1], [0, 0, 1, 1], [], []>} : vector<8x128xbf16>, vector<128x16xbf16>, vector<8x16xf32> -> vector<8x16xf32>
    %c5_38 = arith.constant 5 : index
    %c0_39 = arith.constant 0 : index
    %c0_40 = arith.constant 0 : index
    %55 = vector.load %arg3[%c5_38, %c0_39, %c0_40] : memref<6x1x128xf32, #tpu.memory_space<vmem>>, vector<1x1x128xf32>
    %56 = vector.shape_cast %55 : vector<1x1x128xf32> to vector<1x128xf32>
    %57 = vector.extract_strided_slice %56 {offsets = [0, 0], sizes = [1, 16], strides = [1, 1]} : vector<1x128xf32> to vector<1x16xf32>
    %58 = vector.broadcast %57 : vector<1x16xf32> to vector<8x16xf32>
    %59 = arith.addf %54, %58 : vector<8x16xf32>
    %cst_41 = arith.constant 0.000000e+00 : f32
    %60 = vector.broadcast %cst_41 : f32 to vector<8x16xf32>
    %61 = arith.subf %60, %59 : vector<8x16xf32>
    %62 = math.exp %61 : vector<8x16xf32>
    %cst_42 = arith.constant 1.000000e+00 : f32
    %63 = vector.broadcast %cst_42 : f32 to vector<8x16xf32>
    %64 = arith.addf %63, %62 : vector<8x16xf32>
    %65 = tpu.reciprocal %64 : vector<8x16xf32> -> vector<8x16xf32>
    %c0_43 = arith.constant 0 : index
    %c0_44 = arith.constant 0 : index
    %66 = vector.load %arg4[%c0_43, %c0_44] : memref<1x16xf32, #tpu.memory_space<vmem>>, vector<1x16xf32>
    %67 = vector.shape_cast %66 : vector<1x16xf32> to vector<1x16xf32>
    %68 = vector.broadcast %67 : vector<1x16xf32> to vector<8x16xf32>
    %cst_45 = arith.constant 0.000000e+00 : f32
    %69 = vector.broadcast %cst_45 : f32 to vector<8x16xf32>
    %70 = arith.cmpf one, %68, %69 : vector<8x16xf32>
    %71 = arith.select %70, %0, %65 : vector<8x16xi1>, vector<8x16xf32>
    %c0_46 = arith.constant 0 : index
    %c0_47 = arith.constant 0 : index
    %72 = vector.load %arg5[%c0_46, %c0_47] : memref<8x16xf32, #tpu.memory_space<vmem>>, vector<8x16xf32>
    tpu.vector_store %arg5[%c0_46, %c0_47], %71 {strides = array<i32>} : memref<8x16xf32, #tpu.memory_space<vmem>>, vector<8x16xf32>,
    return
  }
  func.func @transform_0(%arg0: i32) -> (i32, i32) {
    %c0_i32 = arith.constant 0 : i32
    %c0_i32_0 = arith.constant 0 : i32
    return %arg0, %c0_i32 : i32, i32
  }
  func.func @transform_1(%arg0: i32) -> (i32, i32, i32) {
    %c0_i32 = arith.constant 0 : i32
    %c0_i32_0 = arith.constant 0 : i32
    %c0_i32_1 = arith.constant 0 : i32
    %c0_i32_2 = arith.constant 0 : i32
    return %c0_i32, %c0_i32_0, %c0_i32_1 : i32, i32, i32
  }
  func.func @transform_2(%arg0: i32) -> (i32, i32, i32) {
    %c0_i32 = arith.constant 0 : i32
    %c0_i32_0 = arith.constant 0 : i32
    %c0_i32_1 = arith.constant 0 : i32
    %c0_i32_2 = arith.constant 0 : i32
    return %c0_i32, %c0_i32_0, %c0_i32_1 : i32, i32, i32
  }
  func.func @transform_3(%arg0: i32) -> (i32, i32) {
    %c0_i32 = arith.constant 0 : i32
    %c0_i32_0 = arith.constant 0 : i32
    %c0_i32_1 = arith.constant 0 : i32
    return %c0_i32, %c0_i32_0 : i32, i32
  }
  func.func @transform_4(%arg0: i32) -> (i32, i32) {
    %c0_i32 = arith.constant 0 : i32
    %c0_i32_0 = arith.constant 0 : i32
    return %arg0, %c0_i32 : i32, i32
  }
}

</mosaic_0001>

<bundles_post_ra>
// kernel: tpu_custom_call.1
= control target key start
LH: loop header
LB: loop body
LE: loop exit
PB: predicated region body
PF: predicated region fallthrough
CT: control target
= control target key end

     0   :  { %9 = vsyncpa [#allocation3], 0  ;;  %s1198_s0 = inlined_call_operand.hbm [shape: f32[8,16], index: 0, kind: input, shape index: {}]   ;;  %s1199_s1 = inlined_call_operand.hbm [shape: bf16[6,128,128], index: 1, kind: input, shape index: {}]   ;;  %s1200_s2 = inlined_call_operand.vmem [shape: f32[6,1,128], index: 2, kind: input, shape index: {}]   ;;  %s1201_s3 = inlined_call_operand.vmem [shape: f32[1,16], index: 3, kind: input, shape index: {}]   ;;  %s1202_s4 = inlined_call_operand.hbm [shape: f32[8,16], index: 4, kind: output, shape index: {}]  }
   0x1   :  { %10 = vsyncpa [#allocation6], 0 }
   0x2   :  { %11 = vsyncpa [#allocation4], 0  ;;  %s1042_s15 = smov [#allocation2]   ;;  %s1043_s17 = smov [#allocation5]  }
   0x3   :  { %s18_s16 = sshll.u32 %s1042_s15, 4  ;;  %s27_s18 = sshll.u32 %s1043_s17, 4  ;;  %s19_s16 = int_to_ptr.vmem [resolvable:$true] %s18_s16  ;;  %s1074_s18 = int_to_ptr.vmem [resolvable:$true] %s27_s18 }
   0x4   :  { %s970_s21 = scalar_lea.hbm %s1198_s0, 128 }
   0x5   :  { %p971_p0 = scmp.ne.s32.totalorder %s1198_s0, %s970_s21  ;;  %p974_p1 = scmp.lt.u32.totalorder %s970_s21, %s1198_s0 }
   0x7   :  { %p976_p2 = pnand %p974_p1, %p971_p0 }
   0x9   :  { %979 = shalt.err (!%p976_p2)
}
   0xa   :  { %s980_s26 = scalar_lea.vmem %s19_s16, 128  ;;  %p985_p4 = scmp.lt.s32.totalorder %s19_s16, %s19_s16 }
   0xb   :  { %p981_p3 = scmp.ne.s32.totalorder %s19_s16, %s980_s26  ;;  %p986_p5 = scmp.lt.s32.totalorder %s980_s26, %s980_s26 }
   0xd   :  { %p987_p6 = por %p986_p5, %p985_p4 }
   0xf   :  { %p988_p7 = pnand %p987_p6, %p981_p3 }
  0x11   :  { %991 = shalt.err (!%p988_p7)
}
  0x12   :  { %21 = dma.hbm_to_vmem [thread:$0]  %s1198_s0, 128, %s19_s16, [#allocation3]  }
  0x13   :  { %s992_s5 = scalar_lea.hbm %s1199_s1, 6144 }
  0x14   :  { %p993_p8 = scmp.ne.s32.totalorder %s1199_s1, %s992_s5  ;;  %p996_p9 = scmp.lt.u32.totalorder %s992_s5, %s1199_s1 }
  0x16   :  { %p998_p10 = pnand %p996_p9, %p993_p8 }
  0x18   :  { %1001 = shalt.err (!%p998_p10)
}
  0x19   :  { %s1002_s10 = scalar_lea.vmem %s1074_s18, 6144  ;;  %p1007_p12 = scmp.lt.s32.totalorder %s1074_s18, %s1074_s18 }
  0x1a   :  { %p1003_p11 = scmp.ne.s32.totalorder %s1074_s18, %s1002_s10  ;;  %p1008_p13 = scmp.lt.s32.totalorder %s1002_s10, %s1002_s10 }
  0x1c   :  { %p1009_p0 = por %p1008_p13, %p1007_p12 }
  0x1e   :  { %p1010_p1 = pnand %p1009_p0, %p1003_p11 }
  0x20   :  { %1013 = shalt.err (!%p1010_p1)
}
  0x21   :  { %s1044_s0 = smov 64   ;;  %s1045_s11 = smov 4  }
  0x22   :  { %33 = dma.hbm_to_vmem [thread:$0]  %s1199_s1, 6144, %s1074_s18, [#allocation6], %s1044_s0, %s1044_s0, %s1045_s11  }
  0x23   :  { %1036 = dma.done.wait [#allocation3], 128  }
  0x24   :  { %1037 = vsyncadd [#allocation3], 4294967168 }
  0x25   :  { %1038 = dma.done.wait [#allocation6], 6144  }
  0x26   :  { %1039 = vsyncadd [#allocation6], 4294961152  ;;  %v1046_v0 = vmov 0.0   ;;  %vm1047_vm0 = vmmov 0   ;;  %v925_v1 = vld [vmem:[#allocation5] sm:$0xff]   ;;  %v1111_v2 = vld [vmem:[#allocation2] sm:$0xff] }
  0x27   :  { %812 = vmatprep.subr.bf16.mxu0 %v1046_v0  ;;  %814 = vmatprep.mubr.msk.bf16.mxu0 %vm1047_vm0, %v1046_v0  ;;  %v46_v3 = vpack.c.bf16 %v1111_v2, %v1111_v2  ;;  %vm62_vm1 = vcmask 130048   ;;  %v926_v4 = vld [vmem:[#allocation5 + $0x40] sm:$0xff]   ;;  %v927_v5 = vld [vmem:[#allocation5 + $0x48] sm:$0xff]   ;;  %v928_v6 = vld [vmem:[#allocation5 + $0x50] sm:$0xff]   ;;  %s1048_s27 = smov [#allocation7]  }
  0x28   :  { %818 = vmatprep.subr.bf16.mxu1 %v1046_v0  ;;  %834 = vmatprep.mubr.msk.bf16.mxu1 %vm1047_vm0, %v1046_v0  ;;  %v929_v7 = vld [vmem:[#allocation5 + $0x58] sm:$0xff]   ;;  %v930_v8 = vld [vmem:[#allocation5 + $0x60] sm:$0xff]   ;;  %v931_v9 = vld [vmem:[#allocation5 + $0x68] sm:$0xff]   ;;  %s701_s28 = sshll.u32 %s1048_s27, 4  ;;  %s702_s28 = int_to_ptr.vmem [resolvable:$true] %s701_s28 }
  0x29   :  { %813 = vmatpush3.bf16.msra.mxu0 %v925_v1  ;;  %819 = vmatpush3.bf16.msra.mxu1 %v926_v4  ;;  %v932_v10 = vld [vmem:[#allocation5 + $0x70] sm:$0xff]   ;;  %v933_v11 = vld [vmem:[#allocation5 + $0x78] sm:$0xff]   ;;  %v934_v12 = vld [vmem:[#allocation5 + $0x80] sm:$0xff]   ;;  %p1019_p3 = scmp.lt.s32.totalorder %s702_s28, %s702_s28 }
  0x2a   :  { %838 = vmatprep.subr.bf16.mxu0 %v1046_v0  ;;  %820 = vmatprep.subr.bf16.mxu1 %v1046_v0  ;;  %v935_v13 = vld [vmem:[#allocation5 + $0x88] sm:$0xff]   ;;  %v936_v14 = vld [vmem:[#allocation5 + $0x90] sm:$0xff]   ;;  %v937_v15 = vld [vmem:[#allocation5 + $0x98] sm:$0xff]  }
  0x2b   :  { %v938_v16 = vld [vmem:[#allocation5 + $0xa0] sm:$0xff]   ;;  %v939_v17 = vld [vmem:[#allocation5 + $0xa8] sm:$0xff]   ;;  %v711_v18 = vld [vmem:[%s1200_s2] ss:$0 sm:$0xff] }
  0x2c   :  { %815 = vmatmul.mubr.msk.bf16.vlgmr.msra.gmra.mrb[0].mxu0 %vm62_vm1, %v46_v3  ;;  %v940_v26 = vld [vmem:[#allocation5 + $0xb0] sm:$0xff]   ;;  %v941_v27 = vld [vmem:[#allocation5 + $0xb8] sm:$0xff]   ;;  %v942_v28 = vld [vmem:[#allocation5 + $0xc0] sm:$0xff]  }
  0x2d   :  { %854 = vmatprep.mubr.msk.bf16.mxu0 %vm1047_vm0, %v1046_v0  ;;  %821 = vmatpush3.bf16.msra.mxu1 %v927_v5  ;;  %v943_v29 = vld [vmem:[#allocation5 + $0xc8] sm:$0xff]   ;;  %v944_v30 = vld [vmem:[#allocation5 + $0xd0] sm:$0xff]   ;;  %v945_v31 = vld [vmem:[#allocation5 + $0xd8] sm:$0xff]  }
  0x2e   :  { %822 = vmatprep.subr.bf16.mxu1 %v1046_v0  ;;  %839 = vmatpush3.bf16.msra.mxu0 %v934_v12  ;;  %v946_v32 = vld [vmem:[#allocation5 + $0xe0] sm:$0xff]   ;;  %v947_v33 = vld [vmem:[#allocation5 + $0xe8] sm:$0xff]   ;;  %v948_v34 = vld [vmem:[#allocation5 + $0xf0] sm:$0xff]  }
  0x2f   :  { %840 = vmatprep.subr.bf16.mxu0 %v1046_v0  ;;  %v715_v35 = vld [vmem:[%s1200_s2 + $0x1] ss:$0 sm:$0xff]  ;;  %v950_v44 = vld [vmem:[#allocation5 + $0x100] sm:$0xff]   ;;  %v951_v45 = vld [vmem:[#allocation5 + $0x108] sm:$0xff]  }
  0x30   :  { %v949_v43 = vld [vmem:[#allocation5 + $0xf8] sm:$0xff]   ;;  %v952_v46 = vld [vmem:[#allocation5 + $0x110] sm:$0xff]   ;;  %v954_v48 = vld [vmem:[#allocation5 + $0x120] sm:$0xff]  }
  0x31   :  { %823 = vmatpush3.bf16.msra.mxu1 %v928_v6  ;;  %v953_v47 = vld [vmem:[#allocation5 + $0x118] sm:$0xff]   ;;  %v955_v49 = vld [vmem:[#allocation5 + $0x128] sm:$0xff]   ;;  %v956_v57 = vld [vmem:[#allocation5 + $0x130] sm:$0xff]  }
  0x32   :  { %824 = vmatprep.subr.bf16.mxu1 %v1046_v0  ;;  %841 = vmatpush3.bf16.msra.mxu0 %v935_v13  ;;  %v725_v50 = vld [vmem:[%s1200_s2 + $0x2] ss:$0 sm:$0xff]  ;;  %v958_v59 = vld [vmem:[#allocation5 + $0x140] sm:$0xff]   ;;  %v959_v60 = vld [vmem:[#allocation5 + $0x148] sm:$0xff]  }
  0x33   :  { %842 = vmatprep.subr.bf16.mxu0 %v1046_v0  ;;  %v957_v58 = vld [vmem:[#allocation5 + $0x138] sm:$0xff]   ;;  %v960_v61 = vld [vmem:[#allocation5 + $0x150] sm:$0xff]   ;;  %v962_v63 = vld [vmem:[#allocation5 + $0x160] sm:$0xff]  }
  0x34   :  { %v961_v62 = vld [vmem:[#allocation5 + $0x158] sm:$0xff]   ;;  %v963_v1 = vld [vmem:[#allocation5 + $0x168] sm:$0xff]  }
  0x35   :  { %825 = vmatpush3.bf16.msra.mxu1 %v929_v7  ;;  %v735_v3 = vld [vmem:[%s1200_s2 + $0x3] ss:$0 sm:$0xff]  ;;  %v745_v13 = vld [vmem:[%s1200_s2 + $0x4] ss:$0 sm:$0xff] }
  0x36   :  { %826 = vmatprep.subr.bf16.mxu1 %v1046_v0  ;;  %843 = vmatpush3.bf16.msra.mxu0 %v936_v14  ;;  %v965_v12 = vld [vmem:[#allocation5 + $0x178] sm:$0xff]  }
  0x37   :  { %844 = vmatprep.subr.bf16.mxu0 %v1046_v0 }
  0x39   :  { %827 = vmatpush3.bf16.msra.mxu1 %v930_v8 }
  0x3a   :  { %828 = vmatprep.subr.bf16.mxu1 %v1046_v0  ;;  %845 = vmatpush3.bf16.msra.mxu0 %v937_v15 }
  0x3b   :  { %846 = vmatprep.subr.bf16.mxu0 %v1046_v0 }
  0x3d   :  { %829 = vmatpush3.bf16.msra.mxu1 %v931_v9 }
  0x3e   :  { %830 = vmatprep.subr.bf16.mxu1 %v1046_v0  ;;  %847 = vmatpush3.bf16.msra.mxu0 %v938_v16 }
  0x3f   :  { %848 = vmatprep.subr.bf16.mxu0 %v1046_v0 }
  0x41   :  { %831 = vmatpush3.bf16.msra.mxu1 %v932_v10 }
  0x42   :  { %832 = vmatprep.subr.bf16.mxu1 %v1046_v0  ;;  %849 = vmatpush3.bf16.msra.mxu0 %v939_v17 }
  0x43   :  { %850 = vmatprep.subr.bf16.mxu0 %v1046_v0 }
  0x45   :  { %833 = vmatpush3.bf16.msra.mxu1 %v933_v11  ;;  %v964_v11 = vld [vmem:[#allocation5 + $0x170] sm:$0xff]  }
  0x46   :  { %858 = vmatprep.subr.bf16.mxu1 %v1046_v0  ;;  %851 = vmatpush3.bf16.msra.mxu0 %v940_v26 }
  0x47   :  { %852 = vmatprep.subr.bf16.mxu0 %v1046_v0 }
  0x4a   :  { %853 = vmatpush3.bf16.msra.mxu0 %v941_v27 }
  0x4b   :  { %878 = vmatprep.subr.bf16.mxu0 %v1046_v0 }
  0xff   :  { %v100_v19 = vpop.f32.mrb[0].mxu0 }
 0x100   :  { %v101_v20 = vadd.f32 %v711_v18, %v100_v19  ;;  %v816_v21 = vpop.f32.mrb[1].mxu0 }
 0x101   :  { %v103_v22 = vpop.f32.mrb[2].mxu0  ;;  %v755_v21 = vld [vmem:[%s1200_s2 + $0x5] ss:$0 sm:$0xff]  ;;  %s1014_s2 = scalar_lea.vmem %s702_s28, 128 }
 0x102   :  { %v106_v23 = vmax.f32 %v101_v20, 0.0  ;;  %v817_v24 = vpop.f32.mrb[3].mxu0  ;;  %p1015_p2 = scmp.ne.s32.totalorder %s702_s28, %s1014_s2  ;;  %p1020_p4 = scmp.lt.s32.totalorder %s1014_s2, %s1014_s2 }
 0x104   :  { %v107_v25 = vpack.c.bf16 %v106_v23, %v106_v23  ;;  %p1021_p5 = por %p1020_p4, %p1019_p3 }
 0x106   :  { %835 = vmatmul.mubr.bf16.vlgmr.msra.gmra.mrb[0].mxu1 %v107_v25  ;;  %p1022_p6 = pnand %p1021_p5, %p1015_p2 }
 0x107   :  { %874 = vmatprep.mubr.msk.bf16.mxu1 %vm1047_vm0, %v1046_v0  ;;  %859 = vmatpush3.bf16.msra.mxu1 %v942_v28 }
 0x108   :  { %860 = vmatprep.subr.bf16.mxu1 %v1046_v0 }
 0x10b   :  { %861 = vmatpush3.bf16.msra.mxu1 %v943_v29 }
 0x10c   :  { %862 = vmatprep.subr.bf16.mxu1 %v1046_v0 }
 0x10f   :  { %863 = vmatpush3.bf16.msra.mxu1 %v944_v30  ;;  %v764_v30 = vld [vmem:[%s1201_s3] ss:$0 sm:$0xff] }
 0x110   :  { %864 = vmatprep.subr.bf16.mxu1 %v1046_v0  ;;  %vm692_vm2 = vcmp.ne.f32.partialorder %v764_v30, 0.0 }
 0x113   :  { %865 = vmatpush3.bf16.msra.mxu1 %v945_v31 }
 0x114   :  { %866 = vmatprep.subr.bf16.mxu1 %v1046_v0 }
 0x117   :  { %867 = vmatpush3.bf16.msra.mxu1 %v946_v32 }
 0x118   :  { %868 = vmatprep.subr.bf16.mxu1 %v1046_v0 }
 0x11b   :  { %869 = vmatpush3.bf16.msra.mxu1 %v947_v33 }
 0x11c   :  { %870 = vmatprep.subr.bf16.mxu1 %v1046_v0 }
 0x11f   :  { %871 = vmatpush3.bf16.msra.mxu1 %v948_v34 }
 0x120   :  { %872 = vmatprep.subr.bf16.mxu1 %v1046_v0 }
 0x123   :  { %873 = vmatpush3.bf16.msra.mxu1 %v949_v43 }
 0x124   :  { %898 = vmatprep.subr.bf16.mxu1 %v1046_v0 }
 0x1d9   :  { %v215_v36 = vpop.f32.mrb[0].mxu1 }
 0x1da   :  { %v216_v37 = vadd.f32 %v715_v35, %v215_v36  ;;  %v836_v38 = vpop.f32.mrb[1].mxu1 }
 0x1db   :  { %v218_v39 = vpop.f32.mrb[2].mxu1 }
 0x1dc   :  { %v221_v40 = vmax.f32 %v216_v37, 0.0  ;;  %v837_v41 = vpop.f32.mrb[3].mxu1 }
 0x1de   :  { %v222_v42 = vpack.c.bf16 %v221_v40, %v221_v40 }
 0x1e0   :  { %855 = vmatmul.mubr.bf16.vlgmr.msra.gmra.mrb[4].mxu0 %v222_v42 }
 0x1e1   :  { %894 = vmatprep.mubr.msk.bf16.mxu0 %vm1047_vm0, %v1046_v0  ;;  %879 = vmatpush3.bf16.msra.mxu0 %v950_v44 }
 0x1e2   :  { %880 = vmatprep.subr.bf16.mxu0 %v1046_v0 }
 0x1e5   :  { %881 = vmatpush3.bf16.msra.mxu0 %v951_v45 }
 0x1e6   :  { %882 = vmatprep.subr.bf16.mxu0 %v1046_v0 }
 0x1e9   :  { %883 = vmatpush3.bf16.msra.mxu0 %v952_v46 }
 0x1ea   :  { %884 = vmatprep.subr.bf16.mxu0 %v1046_v0 }
 0x1ed   :  { %885 = vmatpush3.bf16.msra.mxu0 %v953_v47 }
 0x1ee   :  { %886 = vmatprep.subr.bf16.mxu0 %v1046_v0 }
 0x1f1   :  { %887 = vmatpush3.bf16.msra.mxu0 %v954_v48 }
 0x1f2   :  { %888 = vmatprep.subr.bf16.mxu0 %v1046_v0 }
 0x1f5   :  { %889 = vmatpush3.bf16.msra.mxu0 %v955_v49 }
 0x1f6   :  { %890 = vmatprep.subr.bf16.mxu0 %v1046_v0 }
 0x1f9   :  { %891 = vmatpush3.bf16.msra.mxu0 %v956_v57 }
 0x1fa   :  { %892 = vmatprep.subr.bf16.mxu0 %v1046_v0 }
 0x1fd   :  { %893 = vmatpush3.bf16.msra.mxu0 %v957_v58 }
 0x2b3   :  { %v330_v51 = vpop.f32.mrb[4].mxu0 }
 0x2b4   :  { %v331_v52 = vadd.f32 %v725_v50, %v330_v51  ;;  %v856_v53 = vpop.f32.mrb[5].mxu0 }
 0x2b5   :  { %v333_v54 = vpop.f32.mrb[6].mxu0 }
 0x2b6   :  { %v336_v55 = vpack.c.bf16 %v331_v52, %v331_v52  ;;  %v857_v56 = vpop.f32.mrb[7].mxu0 }
 0x2b8   :  { %875 = vmatmul.mubr.bf16.vlgmr.msra.gmra.mrb[4].mxu1 %v336_v55 }
 0x2b9   :  { %914 = vmatprep.mubr.msk.bf16.mxu1 %vm1047_vm0, %v1046_v0  ;;  %899 = vmatpush3.bf16.msra.mxu1 %v958_v59 }
 0x2ba   :  { %900 = vmatprep.subr.bf16.mxu1 %v1046_v0 }
 0x2bd   :  { %901 = vmatpush3.bf16.msra.mxu1 %v959_v60 }
 0x2be   :  { %902 = vmatprep.subr.bf16.mxu1 %v1046_v0 }
 0x2c1   :  { %903 = vmatpush3.bf16.msra.mxu1 %v960_v61 }
 0x2c2   :  { %904 = vmatprep.subr.bf16.mxu1 %v1046_v0 }
 0x2c5   :  { %905 = vmatpush3.bf16.msra.mxu1 %v961_v62 }
 0x2c6   :  { %906 = vmatprep.subr.bf16.mxu1 %v1046_v0 }
 0x2c9   :  { %907 = vmatpush3.bf16.msra.mxu1 %v962_v63 }
 0x2ca   :  { %908 = vmatprep.subr.bf16.mxu1 %v1046_v0 }
 0x2cd   :  { %909 = vmatpush3.bf16.msra.mxu1 %v963_v1 }
 0x2ce   :  { %910 = vmatprep.subr.bf16.mxu1 %v1046_v0 }
 0x2d1   :  { %911 = vmatpush3.bf16.msra.mxu1 %v964_v11 }
 0x2d2   :  { %912 = vmatprep.subr.bf16.mxu1 %v1046_v0 }
 0x2d5   :  { %913 = vmatpush3.bf16.msra.mxu1 %v965_v12 }
 0x38b   :  { %v444_v4 = vpop.f32.mrb[4].mxu1 }
 0x38c   :  { %v445_v5 = vadd.f32 %v735_v3, %v444_v4  ;;  %v876_v6 = vpop.f32.mrb[5].mxu1 }
 0x38d   :  { %v447_v7 = vpop.f32.mrb[6].mxu1 }
 0x38e   :  { %v450_v8 = vmax.f32 %v445_v5, 0.0  ;;  %v877_v9 = vpop.f32.mrb[7].mxu1 }
 0x390   :  { %v451_v10 = vpack.c.bf16 %v450_v8, %v450_v8 }
 0x392   :  { %895 = vmatmul.mubr.bf16.vlgmr.msra.gmra.mrb[8].mxu0 %v451_v10 }
 0x465   :  { %v559_v14 = vpop.f32.mrb[8].mxu0 }
 0x466   :  { %v560_v15 = vadd.f32 %v745_v13, %v559_v14  ;;  %v896_v16 = vpop.f32.mrb[9].mxu0 }
 0x467   :  { %v562_v17 = vpop.f32.mrb[10].mxu0 }
 0x468   :  { %v565_v18 = vmax.f32 %v560_v15, 0.0  ;;  %v897_v19 = vpop.f32.mrb[11].mxu0 }
 0x46a   :  { %v583_v20 = vpack.c.bf16 %v565_v18, %v565_v18 }
 0x46c   :  { %915 = vmatmul.mubr.bf16.vlgmr.msra.gmra.mrb[8].mxu1 %v583_v20 }
 0x53f   :  { %v674_v22 = vpop.f32.mrb[8].mxu1 }
 0x540   :  { %v675_v0 = vadd.f32 %v755_v21, %v674_v22  ;;  %v916_v23 = vpop.f32.mrb[9].mxu1 }
 0x541   :  { %v677_v24 = vpop.f32.mrb[10].mxu1 }
 0x542   :  { %v680_v25 = vsub.f32 0.0, %v675_v0  ;;  %v917_v26 = vpop.f32.mrb[11].mxu1 }
 0x544   :  { %v681_v27 = vmul.f32 1.442695, %v680_v25 }
 0x546   :  { %966 = vpow2.f32 %v681_v27 }
 0x550   :  { %v967_v28 = vpop.eup %966 }
 0x551   :  { %v683_v29 = vadd.f32 1.0, %v967_v28 }
 0x553   :  { %968 = vrcp.f32 %v683_v29 }
 0x55d   :  { %v969_v31 = vpop.eup %968 }
 0x55e   :  { %v693_v32 = vsel %vm692_vm2, %v1111_v2, %v969_v31 }
 0x55f   :  { %694 = vst.msk [vmem:[#allocation7] sm:$0xff] %vm62_vm1, %v693_v32 }
 0x560   :  { %1025 = shalt.err (!%p1022_p6)
}
 0x561   :  { %s1026_s3 = scalar_lea.hbm %s1202_s4, 128 }
 0x562   :  { %p1027_p7 = scmp.ne.s32.totalorder %s1202_s4, %s1026_s3  ;;  %p1030_p8 = scmp.lt.u32.totalorder %s1026_s3, %s1202_s4 }
 0x564   :  { %p1032_p9 = pnand %p1030_p8, %p1027_p7 }
 0x566   :  { %1035 = shalt.err (!%p1032_p9)
}
 0x567   :  { %704 = dma.vmem_to_hbm [thread:$0]  %s702_s28, 128, %s1202_s4, [#allocation4]  }
 0x568   :  { %1040 = dma.done.wait [#allocation4], 128  }
 0x569   :  { %1041 = vsyncadd [#allocation4], 4294967168 }
 0x56a   :  { %708 = vsyncpa [#allocation3], 1 }
 0x56b   :  { %709 = vsyncpa [#allocation6], 1 }
 0x56c   :  { %710 = vsyncpa [#allocation4], 1 }

</bundles_post_ra>
